<compile_context>
chip_gen: v7x
topology: tpu7x:2x2x1
jax: 0.10.0
libtpu: 0.0.40
codegen_flags: <defaults>
</compile_context>

<pallas_src>
import jax
import jax.numpy as jnp
from jax.experimental import pallas as pl
from jax.experimental.pallas import tpu as pltpu


def _unproject_kernel(A_ref, t_ref, d_ref, o_ref):
    """One (batch, row-tile) block.

    A_ref: [B, 9]  SMEM    flattened  A = K_inv @ R_1   (row-major 3x3)
    t_ref: [B, 3]  SMEM    translation
    d_ref: [1, th, Wp]     depth tile (native dtype)
    o_ref: [1, 3, th, Wp]  output planes (x, y, z of global_p1)
    """
    b = pl.program_id(0)
    i = pl.program_id(1)
    th, w = d_ref.shape[1], d_ref.shape[2]

    d = d_ref[0]
    if d.dtype != jnp.float32:
        d = d.astype(jnp.float32)                                   # [th, Wp]

    # Pixel coordinates (x = column, y = local row).  The tile's global row
    # offset is folded into the scalar coefficient c_j below (scalar unit),
    # so no per-pixel offset add is needed.
    # TODO(synk): emit the iotas directly as f32 once float iota lowering is
    # guaranteed; the two int32->f32 converts only matter on v7x.
    xx = jax.lax.broadcasted_iota(jnp.int32, (th, w), 1).astype(jnp.float32)
    yy = jax.lax.broadcasted_iota(jnp.int32, (th, w), 0).astype(jnp.float32)
    row_off = (i * th).astype(jnp.float32)

    out_dtype = o_ref.dtype
    for j in range(3):                       # static unroll: 3 output planes
        a0 = A_ref[b, 0 * 3 + j]
        a1 = A_ref[b, 1 * 3 + j]
        a2 = A_ref[b, 2 * 3 + j]
        tj = t_ref[b, j]
        cj = a2 + row_off * a1               # scalar: folds the tile row offset
        val = d * (xx * a0 + yy * a1 + cj) + tj
        o_ref[0, j] = val.astype(out_dtype)


def _vmem_limit_bytes():
    """Generation-aware scoped-VMEM limit: half of physical, capped at 64 MiB.
    (v5e/v6e: 128 MiB physical -> 64 MiB; v7x: 64 MiB physical -> 32 MiB)."""
    cap = 128 * 1024 * 1024
    try:
        cap = int(getattr(pltpu.get_tpu_info(), "vmem_capacity_bytes", cap))
    except Exception:
        pass
    return max(16 * 1024 * 1024, min(64 * 1024 * 1024, cap // 2))


def _pick_tile_h(B, H, W, in_bytes, out_bytes, vmem_limit):
    """Row-tile height.

    Largest tile whose double-buffered footprint fits in ~75% of the scoped
    VMEM limit.  Ragged last blocks are handled by the cdiv grid, so tiles
    smaller than H just need to be multiples of 8.  Rows are only split when
    the batch axis alone does not provide >= 2 grid blocks (v7x dual-TC)."""
    budget = (3 * vmem_limit) // 4
    per_row = 2 * W * (in_bytes + 3 * out_bytes)   # depth + 3 planes, x2 buffers
    max_rows = max(8, budget // max(per_row, 1))

    if H <= max_rows:
        tile = H                                   # whole-height block (always legal)
    else:
        tile = max(8, max_rows - max_rows % 8)     # ragged tail masked by Pallas

    if B * pl.cdiv(H, tile) < 2 and H > 8:
        half = pl.cdiv(pl.cdiv(H, 2), 8) * 8
        if half < tile:
            tile = half
    return tile


def unproject_ptcld(depth_1, R_1, t_1, K_inv, *, tile_h=None, out_dtype=None,
                    layout="torch"):
    """Pallas implementation of unproject_ptcld.forward.

    depth_1: [B, 1, H, W], R_1: [B, 1, 1, 3, 3],
    t_1:     [B, 1, 1, 1, 3], K_inv: [B, 1, 1, 3, 3]

    layout="torch"  -> [B, H, W, 1, 3]  (matches the PyTorch module; costs an
                       extra full HBM transpose pass after the kernel)
    layout="planar" -> [B, 3, H, W]     (kernel-native, no extra pass)
    out_dtype       -> output element type (default: depth dtype).  bf16 cuts
                       write traffic ~3x vs f32.
    """
    B, _, H, W = depth_1.shape

    if out_dtype is None:
        out_dtype = (depth_1.dtype if jnp.issubdtype(depth_1.dtype, jnp.floating)
                     else jnp.float32)
    out_dtype = jnp.dtype(out_dtype)

    # Keep plane stores full-lane: pad W to a multiple of 128.
    W_pad = pl.cdiv(W, 128) * 128

    vmem_limit = _vmem_limit_bytes()
    if tile_h is None:
        tile_h = _pick_tile_h(B, H, W_pad,
                              jnp.dtype(depth_1.dtype).itemsize,
                              out_dtype.itemsize, vmem_limit)
    assert tile_h == H or tile_h % 8 == 0, tile_h

    # Fold the affine chain once per batch (tiny 3x3 matmuls, done by XLA).
    Kinv_m = K_inv.reshape(B, 3, 3).astype(jnp.float32)
    R_m = R_1.reshape(B, 3, 3).astype(jnp.float32)
    A_flat = jnp.matmul(Kinv_m, R_m).reshape(B, 9)         # [B, 9]
    t = t_1.reshape(B, 3).astype(jnp.float32)              # [B, 3]

    d = depth_1.reshape(B, H, W)                           # native dtype
    if W_pad != W:
        d = jnp.pad(d, ((0, 0), (0, 0), (0, W_pad - W)))

    out = pl.pallas_call(
        _unproject_kernel,
        out_shape=jax.ShapeDtypeStruct((B, 3, H, W_pad), out_dtype),
        grid=(B, pl.cdiv(H, tile_h)),
        in_specs=[
            pl.BlockSpec(memory_space=pltpu.MemorySpace.SMEM),   # A_flat
            pl.BlockSpec(memory_space=pltpu.MemorySpace.SMEM),   # t
            pl.BlockSpec((1, tile_h, W_pad), lambda b, i: (b, i, 0)),
        ],
        out_specs=pl.BlockSpec((1, 3, tile_h, W_pad), lambda b, i: (b, 0, i, 0)),
        compiler_params=pltpu.CompilerParams(
            dimension_semantics=("parallel", "parallel"),
            vmem_limit_bytes=vmem_limit,
        ),
    )(A_flat, t, d)

    if W_pad != W:
        out = out[..., :W]

    if layout == "planar":
        return out                                          # [B, 3, H, W]
    # NOTE: extra full HBM pass into a 3-wide lane layout (kept only to match
    # the PyTorch module's output layout).
    return jnp.moveaxis(out, 1, -1).reshape(B, H, W, 1, 3)


def unproject_ptcld_ref(depth_1, R_1, t_1, K_inv):
    """Plain-JAX reference mirroring the PyTorch module exactly."""
    B, _, H, W = depth_1.shape
    yy, xx = jnp.meshgrid(jnp.arange(H, dtype=jnp.float32),
                          jnp.arange(W, dtype=jnp.float32), indexing="ij")
    coord = jnp.stack([xx, yy, jnp.ones_like(xx)], axis=-1)
    coord = coord[None, :, :, None, :]                      # [1, H, W, 1, 3]
    d = depth_1.astype(jnp.float32).reshape(B, H, W, 1, 1)
    p1_camera_1 = d * jnp.matmul(coord, K_inv.astype(jnp.float32))
    global_p1 = jnp.matmul(p1_camera_1, R_1.astype(jnp.float32)) + t_1.astype(jnp.float32)
    return global_p1


def _make_inputs(key, B, H, W, depth_dtype=jnp.float32):
    k1, k2, k3 = jax.random.split(key, 3)
    depth = jax.random.uniform(k1, (B, 1, H, W),
                               minval=2.0, maxval=4.0).astype(depth_dtype)
    # Per-batch rotation about z (right-multiplied, as in the torch module).
    theta = jax.random.uniform(k2, (B,), minval=-0.5, maxval=0.5)
    c, s = jnp.cos(theta), jnp.sin(theta)
    z, o = jnp.zeros_like(c), jnp.ones_like(c)
    R = jnp.stack([jnp.stack([c, -s, z], -1),
                   jnp.stack([s, c, z], -1),
                   jnp.stack([z, z, o], -1)], -2)            # [B, 3, 3]
    R_1 = R.reshape(B, 1, 1, 3, 3).astype(jnp.float32)
    t_1 = jax.random.uniform(k3, (B, 1, 1, 1, 3),
                             minval=-0.2, maxval=0.2).astype(jnp.float32)
    # Right-multiplied inverse intrinsics: [x, y, 1] @ K_inv = [(x-cx)/f, (y-cy)/f, 1]
    f, cx, cy = 100.0, W / 2.0, H / 2.0
    Kinv = jnp.array([[1.0 / f, 0.0, 0.0],
                      [0.0, 1.0 / f, 0.0],
                      [-cx / f, -cy / f, 1.0]], dtype=jnp.float32)
    K_inv = jnp.broadcast_to(Kinv, (B, 1, 1, 3, 3))
    return depth, R_1, t_1, K_inv


if __name__ == "__main__":
    key = jax.random.PRNGKey(0)

    # Check 1: aligned shapes, torch layout, f32 output (exact semantics).
    B, H, W = 2, 16, 128
    depth, R_1, t_1, K_inv = _make_inputs(key, B, H, W)
    out = jax.block_until_ready(unproject_ptcld(depth, R_1, t_1, K_inv))
    ref = unproject_ptcld_ref(depth, R_1, t_1, K_inv)
    assert out.shape == ref.shape == (B, H, W, 1, 3), out.shape
    assert jnp.allclose(out, ref, rtol=1e-5, atol=1e-4), (
        float(jnp.max(jnp.abs(out - ref))))

    # Check 2: ragged H (not multiple of tile), W not a multiple of 128
    # (exercises W padding + tail-block write masking), planar layout.
    B2, H2, W2 = 2, 20, 160
    depth2, R_2, t_2, K_inv2 = _make_inputs(jax.random.PRNGKey(1), B2, H2, W2)
    out2 = jax.block_until_ready(
        unproject_ptcld(depth2, R_2, t_2, K_inv2, tile_h=8, layout="planar"))
    ref2 = unproject_ptcld_ref(depth2, R_2, t_2, K_inv2)
    ref2_planar = jnp.moveaxis(ref2.reshape(B2, H2, W2, 3), -1, 1)
    assert out2.shape == (B2, 3, H2, W2), out2.shape
    assert jnp.allclose(out2, ref2_planar, rtol=1e-5, atol=1e-4), (
        float(jnp.max(jnp.abs(out2 - ref2_planar))))

    # Check 3: bf16 output planes (traffic-reduced path).
    out3 = jax.block_until_ready(
        unproject_ptcld(depth, R_1, t_1, K_inv, out_dtype=jnp.bfloat16))
    assert out3.dtype == jnp.bfloat16
    assert jnp.allclose(out3.astype(jnp.float32), ref, rtol=2e-2, atol=5e-2), (
        float(jnp.max(jnp.abs(out3.astype(jnp.float32) - ref))))

    print("KERNEL_OK")
</pallas_src>

<mosaic_0001>
module attributes {stable_mosaic.version = 11 : i64} {
  func.func @_unproject_kernel(%arg0: i32, %arg1: i32, %arg2: memref<2x9xf32, #tpu.memory_space<smem>>, %arg3: memref<2x3xf32, #tpu.memory_space<smem>>, %arg4: memref<1x16x128xf32, #tpu.memory_space<vmem>>, %arg5: memref<1x3x16x128xf32, #tpu.memory_space<vmem>>) attributes {dimension_semantics = [#tpu.dimension_semantics<parallel>, #tpu.dimension_semantics<parallel>], iteration_bounds = array<i64: 2, 1>, scalar_prefetch = 0 : i64, scratch_operands = 0 : i64, tpu.core_type = #tpu.core_type<tc>, window_params = [{transform_indices = @transform_0, window_bounds = array<i64: 2, 9>}, {transform_indices = @transform_1, window_bounds = array<i64: 2, 3>}, {transform_indices = @transform_2, window_bounds = array<i64: 1, 16, 128>}, {transform_indices = @transform_3, window_bounds = array<i64: 1, 3, 16, 128>}]} {
    %c0 = arith.constant 0 : index
    %c0_0 = arith.constant 0 : index
    %c0_1 = arith.constant 0 : index
    %0 = vector.load %arg4[%c0, %c0_0, %c0_1] : memref<1x16x128xf32, #tpu.memory_space<vmem>>, vector<1x16x128xf32>
    %1 = vector.shape_cast %0 : vector<1x16x128xf32> to vector<16x128xf32>
    %2 = tpu.iota {dimensions = array<i32: 1>} : vector<16x128xi32>
    %3 = arith.sitofp %2 : vector<16x128xi32> to vector<16x128xf32>
    %4 = tpu.iota {dimensions = array<i32: 0>} : vector<16x128xi32>
    %5 = arith.sitofp %4 : vector<16x128xi32> to vector<16x128xf32>
    %c16_i32 = arith.constant 16 : i32
    %6 = arith.muli %arg1, %c16_i32 : i32
    %7 = arith.sitofp %6 : i32 to f32
    %8 = arith.index_cast %arg0 : i32 to index
    %c0_2 = arith.constant 0 : index
    %9 = memref.load %arg2[%8, %c0_2] : memref<2x9xf32, #tpu.memory_space<smem>>
    %10 = arith.index_cast %arg0 : i32 to index
    %c3 = arith.constant 3 : index
    %11 = memref.load %arg2[%10, %c3] : memref<2x9xf32, #tpu.memory_space<smem>>
    %12 = arith.index_cast %arg0 : i32 to index
    %c6 = arith.constant 6 : index
    %13 = memref.load %arg2[%12, %c6] : memref<2x9xf32, #tpu.memory_space<smem>>
    %14 = arith.index_cast %arg0 : i32 to index
    %c0_3 = arith.constant 0 : index
    %15 = memref.load %arg3[%14, %c0_3] : memref<2x3xf32, #tpu.memory_space<smem>>
    %16 = arith.mulf %7, %11 : f32
    %17 = arith.addf %13, %16 : f32
    %18 = vector.broadcast %9 : f32 to vector<16x128xf32>
    %19 = arith.mulf %3, %18 : vector<16x128xf32>
    %20 = vector.broadcast %11 : f32 to vector<16x128xf32>
    %21 = arith.mulf %5, %20 : vector<16x128xf32>
    %22 = arith.addf %19, %21 : vector<16x128xf32>
    %23 = vector.broadcast %17 : f32 to vector<16x128xf32>
    %24 = arith.addf %22, %23 : vector<16x128xf32>
    %25 = arith.mulf %1, %24 : vector<16x128xf32>
    %26 = vector.broadcast %15 : f32 to vector<16x128xf32>
    %27 = arith.addf %25, %26 : vector<16x128xf32>
    %c0_4 = arith.constant 0 : index
    %c0_5 = arith.constant 0 : index
    %c0_6 = arith.constant 0 : index
    %c0_7 = arith.constant 0 : index
    %28 = vector.load %arg5[%c0_4, %c0_5, %c0_6, %c0_7] : memref<1x3x16x128xf32, #tpu.memory_space<vmem>>, vector<1x1x16x128xf32>
    %29 = vector.shape_cast %28 : vector<1x1x16x128xf32> to vector<16x128xf32>
    %30 = vector.shape_cast %27 : vector<16x128xf32> to vector<1x1x16x128xf32>
    tpu.vector_store %arg5[%c0_4, %c0_5, %c0_6, %c0_7], %30 {strides = array<i32>} : memref<1x3x16x128xf32, #tpu.memory_space<vmem>>, vector<1x1x16x128xf32>,
    %31 = arith.index_cast %arg0 : i32 to index
    %c1 = arith.constant 1 : index
    %32 = memref.load %arg2[%31, %c1] : memref<2x9xf32, #tpu.memory_space<smem>>
    %33 = arith.index_cast %arg0 : i32 to index
    %c4 = arith.constant 4 : index
    %34 = memref.load %arg2[%33, %c4] : memref<2x9xf32, #tpu.memory_space<smem>>
    %35 = arith.index_cast %arg0 : i32 to index
    %c7 = arith.constant 7 : index
    %36 = memref.load %arg2[%35, %c7] : memref<2x9xf32, #tpu.memory_space<smem>>
    %37 = arith.index_cast %arg0 : i32 to index
    %c1_8 = arith.constant 1 : index
    %38 = memref.load %arg3[%37, %c1_8] : memref<2x3xf32, #tpu.memory_space<smem>>
    %39 = arith.mulf %7, %34 : f32
    %40 = arith.addf %36, %39 : f32
    %41 = vector.broadcast %32 : f32 to vector<16x128xf32>
    %42 = arith.mulf %3, %41 : vector<16x128xf32>
    %43 = vector.broadcast %34 : f32 to vector<16x128xf32>
    %44 = arith.mulf %5, %43 : vector<16x128xf32>
    %45 = arith.addf %42, %44 : vector<16x128xf32>
    %46 = vector.broadcast %40 : f32 to vector<16x128xf32>
    %47 = arith.addf %45, %46 : vector<16x128xf32>
    %48 = arith.mulf %1, %47 : vector<16x128xf32>
    %49 = vector.broadcast %38 : f32 to vector<16x128xf32>
    %50 = arith.addf %48, %49 : vector<16x128xf32>
    %c0_9 = arith.constant 0 : index
    %c1_10 = arith.constant 1 : index
    %c0_11 = arith.constant 0 : index
    %c0_12 = arith.constant 0 : index
    %51 = vector.load %arg5[%c0_9, %c1_10, %c0_11, %c0_12] : memref<1x3x16x128xf32, #tpu.memory_space<vmem>>, vector<1x1x16x128xf32>
    %52 = vector.shape_cast %51 : vector<1x1x16x128xf32> to vector<16x128xf32>
    %53 = vector.shape_cast %50 : vector<16x128xf32> to vector<1x1x16x128xf32>
    tpu.vector_store %arg5[%c0_9, %c1_10, %c0_11, %c0_12], %53 {strides = array<i32>} : memref<1x3x16x128xf32, #tpu.memory_space<vmem>>, vector<1x1x16x128xf32>,
    %54 = arith.index_cast %arg0 : i32 to index
    %c2 = arith.constant 2 : index
    %55 = memref.load %arg2[%54, %c2] : memref<2x9xf32, #tpu.memory_space<smem>>
    %56 = arith.index_cast %arg0 : i32 to index
    %c5 = arith.constant 5 : index
    %57 = memref.load %arg2[%56, %c5] : memref<2x9xf32, #tpu.memory_space<smem>>
    %58 = arith.index_cast %arg0 : i32 to index
    %c8 = arith.constant 8 : index
    %59 = memref.load %arg2[%58, %c8] : memref<2x9xf32, #tpu.memory_space<smem>>
    %60 = arith.index_cast %arg0 : i32 to index
    %c2_13 = arith.constant 2 : index
    %61 = memref.load %arg3[%60, %c2_13] : memref<2x3xf32, #tpu.memory_space<smem>>
    %62 = arith.mulf %7, %57 : f32
    %63 = arith.addf %59, %62 : f32
    %64 = vector.broadcast %55 : f32 to vector<16x128xf32>
    %65 = arith.mulf %3, %64 : vector<16x128xf32>
    %66 = vector.broadcast %57 : f32 to vector<16x128xf32>
    %67 = arith.mulf %5, %66 : vector<16x128xf32>
    %68 = arith.addf %65, %67 : vector<16x128xf32>
    %69 = vector.broadcast %63 : f32 to vector<16x128xf32>
    %70 = arith.addf %68, %69 : vector<16x128xf32>
    %71 = arith.mulf %1, %70 : vector<16x128xf32>
    %72 = vector.broadcast %61 : f32 to vector<16x128xf32>
    %73 = arith.addf %71, %72 : vector<16x128xf32>
    %c0_14 = arith.constant 0 : index
    %c2_15 = arith.constant 2 : index
    %c0_16 = arith.constant 0 : index
    %c0_17 = arith.constant 0 : index
    %74 = vector.load %arg5[%c0_14, %c2_15, %c0_16, %c0_17] : memref<1x3x16x128xf32, #tpu.memory_space<vmem>>, vector<1x1x16x128xf32>
    %75 = vector.shape_cast %74 : vector<1x1x16x128xf32> to vector<16x128xf32>
    %76 = vector.shape_cast %73 : vector<16x128xf32> to vector<1x1x16x128xf32>
    tpu.vector_store %arg5[%c0_14, %c2_15, %c0_16, %c0_17], %76 {strides = array<i32>} : memref<1x3x16x128xf32, #tpu.memory_space<vmem>>, vector<1x1x16x128xf32>,
    return
  }
  func.func @transform_0(%arg0: i32, %arg1: i32) -> (i32, i32) {
    %c0_i32 = arith.constant 0 : i32
    %c0_i32_0 = arith.constant 0 : i32
    %c0_i32_1 = arith.constant 0 : i32
    return %c0_i32, %c0_i32_0 : i32, i32
  }
  func.func @transform_1(%arg0: i32, %arg1: i32) -> (i32, i32) {
    %c0_i32 = arith.constant 0 : i32
    %c0_i32_0 = arith.constant 0 : i32
    %c0_i32_1 = arith.constant 0 : i32
    return %c0_i32, %c0_i32_0 : i32, i32
  }
  func.func @transform_2(%arg0: i32, %arg1: i32) -> (i32, i32, i32) {
    %c0_i32 = arith.constant 0 : i32
    %c0_i32_0 = arith.constant 0 : i32
    return %arg0, %arg1, %c0_i32 : i32, i32, i32
  }
  func.func @transform_3(%arg0: i32, %arg1: i32) -> (i32, i32, i32, i32) {
    %c0_i32 = arith.constant 0 : i32
    %c0_i32_0 = arith.constant 0 : i32
    %c0_i32_1 = arith.constant 0 : i32
    return %arg0, %c0_i32, %arg1, %c0_i32_0 : i32, i32, i32, i32
  }
}

</mosaic_0001>

<bundles_post_ra>
// kernel: tpu_custom_call.1
= control target key start
LH: loop header
LB: loop body
LE: loop exit
PB: predicated region body
PF: predicated region fallthrough
CT: control target
= control target key end

     0   :  { %s1013_s0 = inlined_call_operand.hbm [shape: f32[2,9], index: 0, kind: input, shape index: {}]   ;;  %s1014_s1 = inlined_call_operand.hbm [shape: f32[2,3], index: 1, kind: input, shape index: {}]   ;;  %s1015_s2 = inlined_call_operand.hbm [shape: f32[2,16,128], index: 2, kind: input, shape index: {}]   ;;  %s1016_s3 = inlined_call_operand.hbm [shape: f32[2,3,16,128], index: 3, kind: output, shape index: {}]  }
   0x1   :  { %1021 = sst [smem:[#allocation14_spill]] %s1013_s0 }
   0x2   :  { %8 = vsyncpa [#allocation5], 0 }
   0x3   :  { %9 = vsyncpa [#allocation7], 0 }
   0x4   :  { %10 = vsyncpa [#allocation3], 0 }
   0x5   :  { %12 = vsyncpa [#allocation3 + $0x1], 0 }
   0x6   :  { %13 = vsyncpa [#allocation4], 0 }
   0x7   :  { %15 = vsyncpa [#allocation4 + $0x1], 0  ;;  %s736_s12 = smov 0   ;;  %s738_s13 = smov 0  }
   0x8   :  { %s740_s14 = smov 0   ;;  %s742_s15 = smov 0  }
   0x9   :  { %s744_s16 = smov 0   ;;  %s746_s17 = smov 0  }
   0xa LB: > { %s449_s18 = sadd.s32 4294967295, %s706_s17   ;;  %s450_s19 = sadd.s32 4294967294, %s706_s17   ;;  %s706_s17 = sphi %s746_s17, %s21_s17   ;;  %s702_s16 = sphi %s744_s16, %s1043_s16   ;;  %s698_s15 = sphi %s742_s15, %s1042_s15   ;;  %s694_s14 = sphi %s740_s14, %s1041_s14   ;;  %s690_s13 = sphi %s738_s13, %s1040_s13   ;;  %s686_s12 = sphi %s736_s12, %s1039_s12  }
   0xb   : > { %p91_p0 = scmp.ne.s32.totalorder %s694_s14, %s690_s13  ;;  %p92_p1 = scmp.eq.s32.totalorder %s706_s17, 0 }
   0xc   : > { %p97_p2 = scmp.ne.s32.totalorder %s690_s13, %s686_s12  ;;  %p774_p3 = scmp.eq.s32.totalorder %s449_s18, 0 }
   0xd   : > { %p123_p4 = scmp.eq.s32.totalorder %s449_s18, 1  ;;  %p93_p5 = por %p92_p1, %p91_p0 }
   0xe   : > { %s1022_s21 = scalar_select %p774_p3, 1, 0 }
   0xf   : > { %p129_p6 = scmp.eq.s32.totalorder %s450_s19, 1  ;;  %p780_p7 = por %p774_p3, %p97_p2 }
  0x10   : > { %p784_p8 = por %p123_p4, %p91_p0  ;;  %p451_p10 = scmp.ge.s32.totalorder %s706_s17, 1 }
  0x11   : > { %s1023_s22 = scalar_select %p780_p7, 1, 0 }
  0x12   : > { %s1024_s23 = scalar_select %p784_p8, 1, 0 }
  0x13   : > { %p788_p9 = por %p129_p6, %p97_p2  ;;  %p136_p11 = scmp.lt.s32.totalorder %s706_s17, 3 }
  0x14   : > { %p502_p1 = scmp.lt.s32.totalorder %s706_s17, 2  ;;  %s167_s27 = sand.u32 1, %s694_s14  }
  0x15   : > { %s1025_s24 = scalar_select %p788_p9, 1, 0 }
  0x16   : > { %p795_p13 = pnand %p451_p10, %p136_p11  ;;  %p802_p7 = pnand %p502_p1, %p93_p5 }
  0x17   : > { %p1028_p0 = scmp.ne.s32.totalorder %s1022_s21, 0  ;;  %s33_s29 = sadd.s32 1, %s702_s16 }
  0x18   : > { %p485_p3 = pneg %p795_p13  ;;  %p814_p4 = scmp.ge.s32.totalorder %s33_s29, 2 }
  0x19   : > { %s1031_s0 = sld [smem:[#allocation14_spill]] }
  0x1a   : > { %p809_p2 = pnand %p485_p3, %p1028_p0 }
  0x1c   : > { %p562_p6 = pneg %p809_p2 }
  0x1f   : > { %s560_s6 = scalar_lea.hbm %s1031_s0, 32 }
  0x20   : > { %p561_p5 = scmp.ne.s32.totalorder %s1031_s0, %s560_s6  ;;  %p567_p11 = scmp.lt.u32.totalorder %s560_s6, %s1031_s0 }
  0x22   : > { %p563_p3 = pnand %p562_p6, %p561_p5 }
  0x24   : > { %p564_p10 = pneg %p563_p3 }
  0x26   : > { %p569_p1 = pnand %p567_p11, %p564_p10 }
  0x28   : > { %572 = shalt.err (!%p569_p1)
}
  0x29   : > { %s708_s11 = smov [#allocation2]   ;;  %s573_s7 = scalar_lea.hbm %s1014_s1, 32 }
  0x2a   : > { %488 = dma.hbm_to_smem (!%p809_p2), %s1031_s0, 32, %s708_s11, [#allocation5]  }
  0x2b   : > { %p574_p0 = scmp.ne.s32.totalorder %s1014_s1, %s573_s7  ;;  %p580_p10 = scmp.lt.u32.totalorder %s573_s7, %s1014_s1 }
  0x2d   : > { %p576_p5 = pnand %p574_p0, %p562_p6 }
  0x2f   : > { %p577_p3 = pneg %p576_p5 }
  0x31   : > { %p582_p11 = pnand %p580_p10, %p577_p3 }
  0x33   : > { %585 = shalt.err (!%p582_p11)
}
  0x34   : > { %s709_s10 = smov [#allocation6]   ;;  %s1045_s29 = smov (%p814_p4, %s33_s29), 0 }
  0x35   : > { %491 = dma.hbm_to_smem (!%p809_p2), %s1014_s1, 32, %s709_s10, [#allocation7]  }
  0x36   : > { %s455_s20 = sshll.u32 %s167_s27, 4  ;;  %s470_s28 = sshll.u32 %s702_s16, 8 }
  0x37   : > { %s79_s19 = ssub.s32 %s702_s16, %s1045_s29  ;;  %s860_s7 = scalar_lea.hbm %s1015_s2, %s470_s28 }
  0x38   : > { %p82_p6 = scmp.eq.s32.totalorder %s79_s19, 0  ;;  %s171_s8 = scalar_lea.vmem [#allocation8], %s455_s20 }
  0x39   : > { %s180_s6 = sshll.u32 %s171_s8, 4  ;;  %s1032_s30 = sadd.s32 1, %s694_s14  ;;  %s867_s6 = int_to_ptr.vmem [resolvable:$true] %s180_s6 }
  0x3a   : > { %s865_s9 = scalar_select %p82_p6, %s694_s14, %s1032_s30  }
  0x3b   : > { %s871_s10 = scalar_lea.sflag [#allocation3], %s167_s27  ;;  %s586_s11 = scalar_lea.hbm %s860_s7, 256 }
  0x3c   : > { %p587_p2 = scmp.ne.s32.totalorder %s860_s7, %s586_s11  ;;  %p588_p4 = pneg %p802_p7 }
  0x3d   : > { %s591_s20 = scalar_lea.hbm %s1015_s2, 512  ;;  %p592_p5 = scmp.lt.u32.totalorder %s860_s7, %s1015_s2 }
  0x3e   : > { %p589_p1 = pnand %p588_p4, %p587_p2  ;;  %p593_p3 = scmp.lt.u32.totalorder %s591_s20, %s586_s11 }
  0x3f   : > { %p595_p11 = scmp.lt.u32.totalorder %s586_s11, %s860_s7 }
  0x40   : > { %p590_p0 = pneg %p589_p1  ;;  %p594_p10 = por %p593_p3, %p592_p5 }
  0x42   : > { %p596_p6 = por %p595_p11, %p594_p10 }
  0x44   : > { %p597_p12 = pnand %p596_p6, %p590_p0 }
  0x46   : > { %600 = shalt.err (!%p597_p12)
}
  0x47   : > { %s601_s27 = scalar_lea.vmem %s867_s6, 256  ;;  %s710_s5 = smov [#allocation8]  }
  0x48   : > { %p602_p2 = scmp.ne.s32.totalorder %s867_s6, %s601_s27  ;;  %s606_s8 = sshll.u32 %s710_s5, 4  ;;  %s607_s8 = int_to_ptr.vmem [resolvable:$false] %s606_s8 }
  0x49   : > { %s608_s30 = scalar_lea.vmem %s607_s8, 512  ;;  %p609_p8 = scmp.lt.s32.totalorder %s867_s6, %s607_s8 }
  0x4a   : > { %p604_p1 = pnand %p602_p2, %p588_p4  ;;  %p610_p5 = scmp.lt.s32.totalorder %s608_s30, %s601_s27 }
  0x4c   : > { %p605_p9 = pneg %p604_p1  ;;  %p611_p3 = por %p610_p5, %p609_p8 }
  0x4e   : > { %p612_p10 = pnand %p611_p3, %p605_p9 }
  0x50   : > { %615 = shalt.err (!%p612_p10)
}
  0x51   : > { %s711_s11 = smov 128   ;;  %s712_s18 = smov 8  }
  0x52   : > { %495 = dma.hbm_to_vmem [thread:$0]  (!%p802_p7), %s860_s7, 256, %s867_s6, %s871_s10, %s711_s11, %s711_s11, %s712_s18  }
  0x53   : > { %192 = sbr.rel (%p795_p13) target bundleno = 142 (0x8e), region = 32  ;;  %p1033_p12 = scmp.ne.s32.totalorder (!%p795_p13), %s1022_s21, 0 }
  0x5a   : > { %669 = dma.done.wait (%p1033_p12), [#allocation5], 32  }
  0x5b   : > { %671 = vsyncadd (%p1033_p12), [#allocation5], 4294967264 }
  0x5c   : > { %673 = dma.done.wait (%p1033_p12), [#allocation7], 32  }
  0x5d   : > { %675 = vsyncadd (%p1033_p12), [#allocation7], 4294967264  ;;  %s910_s28 = sand.u32 1, %s690_s13   ;;  %p1034_p7 = scmp.ne.s32.totalorder %s1023_s22, 0 }
  0x5e   : > { %s461_s25 = sshll.u32 %s910_s28, 4  ;;  %s203_s26 = scalar_lea.sflag [#allocation3], %s910_s28 }
  0x5f   : > { %s914_s7 = scalar_lea.vmem [#allocation8], %s461_s25 }
  0x60   : > { %677 = dma.done.wait (%p1034_p7), %s203_s26, 256  }
  0x61   : > { %679 = vsyncadd (%p1034_p7), %s203_s26, 4294967040 }
  0x62   : > { %211 = sfence }
  0x63   : > { %v234_v0 = vlaneseq  ;;  %s921_s21 = sshll.u32 %s698_s15, 7  ;;  %v232_v14 = vld [vmem:[%s914_s7] sm:$0xff]  ;;  %v233_v16 = vld [vmem:[%s914_s7 + $0x8] sm:$0xff]  ;;  %p1036_p9 = scmp.ne.s32.totalorder %s1024_s23, 0 }
  0x64   : > { %s245_s6 = sld [smem:[#allocation2 + %s921_s21]]  ;;  %s246_s10 = sadd.s32 3, %s921_s21 }
  0x65   : > { %v235_v1 = vand.u32 127, %v234_v0  ;;  %v238_v2 = vshrl.u32 %v234_v0, 7  ;;  %s247_s20 = sld [smem:[#allocation2 + %s246_s10]]  ;;  %s248_s22 = sadd.s32 6, %s921_s21 }
  0x66   : > { %s249_s4 = sld [smem:[#allocation2 + %s248_s22]]  ;;  %s270_s5 = sadd.s32 1, %s921_s21 }
  0x67   : > { %v236_v3 = vcvt.s32.f32 %v235_v1  ;;  %v239_v4 = vadd.s32 8, %v238_v2  ;;  %v240_v5 = vcvt.s32.f32 %v238_v2  ;;  %s928_s27 = sld [smem:[#allocation6 + %s921_s21]]  ;;  %s272_s30 = sadd.s32 4, %s921_s21 }
  0x68   : > { %s271_s8 = sld [smem:[#allocation2 + %s270_s5]]  ;;  %s274_s18 = sadd.s32 7, %s921_s21 }
  0x69   : > { %v241_v6 = vcvt.s32.f32 %v239_v4  ;;  %s932_s11 = sld [smem:[#allocation2 + %s272_s30]]  ;;  %s297_s22 = sadd.s32 2, %s921_s21 }
  0x6a   : > { %v253_v7 = vstv %s245_s6  ;;  %s275_s26 = sld [smem:[#allocation2 + %s274_s18]]  ;;  %s299_s6 = sadd.s32 5, %s921_s21 }
  0x6b   : > { %s251_s25 = smul.f32 0.0, %s247_s20  ;;  %v254_v8 = vmul.f32 %v253_v7, %v236_v3  ;;  %v255_v9 = vstv %s247_s20  ;;  %s935_s10 = sld [smem:[#allocation6 + %s270_s5]] }
  0x6c   : > { %v256_v10 = vmul.f32 %v255_v9, %v240_v5  ;;  %v257_v11 = vmul.f32 %v255_v9, %v241_v6  ;;  %s298_s0 = sld [smem:[#allocation2 + %s297_s22]]  ;;  %s301_s30 = sadd.s32 8, %s921_s21 }
  0x6d   : > { %s252_s19 = sadd.f32 %s251_s25, %s249_s4  ;;  %s942_s20 = sld [smem:[#allocation2 + %s299_s6]]  ;;  %v265_v22 = vstv %s928_s27 }
  0x6e   : > { %v258_v12 = vadd.f32 %v256_v10, %v254_v8  ;;  %v259_v13 = vadd.f32 %v257_v11, %v254_v8  ;;  %v279_v17 = vstv %s271_s8  ;;  %s944_s18 = sld [smem:[#allocation2 + %s301_s30]]  ;;  %s1035_s4 = smul.u32 48, %s910_s28 }
  0x6f   : > { %v260_v15 = vstv %s252_s19  ;;  %s277_s5 = smul.f32 0.0, %s932_s11  ;;  %v280_v20 = vmul.f32 %v279_v17, %v236_v3  ;;  %v281_v21 = vstv %s932_s11  ;;  %s949_s7 = sld [smem:[#allocation6 + %s297_s22]] }
  0x70   : > { %v261_v18 = vadd.f32 %v260_v15, %v258_v12  ;;  %v262_v19 = vadd.f32 %v260_v15, %v259_v13  ;;  %v282_v23 = vmul.f32 %v281_v21, %v240_v5  ;;  %v283_v24 = vmul.f32 %v281_v21, %v241_v6  ;;  %s229_s27 = scalar_lea.vmem [#allocation9], %s1035_s4  ;;  %s472_s11 = smul.u32 768, %s698_s15 }
  0x71   : > { %s278_s21 = sadd.f32 %s277_s5, %s275_s26  ;;  %v291_v37 = vstv %s935_s10  ;;  %s340_s8 = sshll.u32 %s229_s27, 4  ;;  %s959_s8 = int_to_ptr.vmem [resolvable:$true] %s340_s8 }
  0x72   : > { %v263_v25 = vmul.f32 %v261_v18, %v232_v14  ;;  %v264_v26 = vmul.f32 %v262_v19, %v233_v16  ;;  %v284_v27 = vadd.f32 %v282_v23, %v280_v20  ;;  %v285_v28 = vadd.f32 %v283_v24, %v280_v20  ;;  %s964_s10 = scalar_lea.hbm %s1016_s3, %s472_s11  ;;  %s325_s15 = scalar_lea.sflag [#allocation4], %s910_s28 }
  0x73   : > { %v306_v29 = vstv %s298_s0  ;;  %v286_v32 = vstv %s278_s21  ;;  %s304_s19 = smul.f32 0.0, %s942_s20  ;;  %v308_v36 = vstv %s942_s20  ;;  %s616_s22 = scalar_lea.vmem %s959_s8, 768 }
  0x74   : > { %v266_v30 = vadd.f32 %v265_v22, %v263_v25  ;;  %v267_v31 = vadd.f32 %v265_v22, %v264_v26  ;;  %v307_v33 = vmul.f32 %v306_v29, %v236_v3  ;;  %v287_v34 = vadd.f32 %v286_v32, %v284_v27  ;;  %p617_p8 = scmp.ne.s32.totalorder %s959_s8, %s616_s22  ;;  %s713_s6 = smov [#allocation9]  }
  0x75   : > { %v288_v35 = vadd.f32 %v286_v32, %v285_v28  ;;  %v309_v38 = vmul.f32 %v308_v36, %v240_v5  ;;  %v310_v39 = vmul.f32 %v308_v36, %v241_v6  ;;  %s305_s0 = sadd.f32 %s304_s19, %s944_s18  ;;  %v318_v49 = vstv %s949_s7  ;;  %s620_s30 = sshll.u32 %s713_s6, 4  ;;  %s621_s30 = int_to_ptr.vmem [resolvable:$false] %s620_s30 }
  0x76   : > { %268 = vst [vmem:[%s229_s27] sm:$0xff] %v266_v30  ;;  %269 = vst [vmem:[%s229_s27 + $0x8] sm:$0xff] %v267_v31  ;;  %v289_v40 = vmul.f32 %v287_v34, %v232_v14  ;;  %p618_p13 = pnand %p617_p8, %p1036_p9  ;;  %s622_s20 = scalar_lea.vmem %s621_s30, 1536 }
  0x77   : > { %v290_v41 = vmul.f32 %v288_v35, %v233_v16  ;;  %v311_v42 = vadd.f32 %v309_v38, %v307_v33  ;;  %v312_v43 = vadd.f32 %v310_v39, %v307_v33  ;;  %v313_v46 = vstv %s305_s0  ;;  %p623_p0 = scmp.lt.s32.totalorder %s959_s8, %s621_s30  ;;  %p624_p11 = scmp.lt.s32.totalorder %s622_s20, %s616_s22 }
  0x78   : > { %v292_v44 = vadd.f32 %v291_v37, %v289_v40  ;;  %p619_p4 = pneg %p618_p13 }
  0x79   : > { %v293_v45 = vadd.f32 %v291_v37, %v290_v41  ;;  %v314_v47 = vadd.f32 %v313_v46, %v311_v42  ;;  %v315_v48 = vadd.f32 %v313_v46, %v312_v43  ;;  %p625_p6 = por %p624_p11, %p623_p0 }
  0x7a   : > { %463 = vst [vmem:[%s229_s27 + $0x10] sm:$0xff] %v292_v44 }
  0x7b   : > { %464 = vst [vmem:[%s229_s27 + $0x18] sm:$0xff] %v293_v45  ;;  %v316_v50 = vmul.f32 %v314_v47, %v232_v14  ;;  %v317_v51 = vmul.f32 %v315_v48, %v233_v16  ;;  %p626_p2 = pnand %p625_p6, %p619_p4 }
  0x7d   : > { %v319_v52 = vadd.f32 %v318_v49, %v316_v50  ;;  %v320_v53 = vadd.f32 %v318_v49, %v317_v51 }
  0x7f   : > { %465 = vst [vmem:[%s229_s27 + $0x20] sm:$0xff] %v319_v52  ;;  %466 = vst [vmem:[%s229_s27 + $0x28] sm:$0xff] %v320_v53 }
  0x80   : > { %629 = shalt.err (!%p626_p2)
}
  0x81   : > { %s630_s18 = scalar_lea.hbm %s964_s10, 768  ;;  %s634_s7 = scalar_lea.hbm %s1016_s3, 1536 }
  0x82   : > { %p631_p1 = scmp.ne.s32.totalorder %s964_s10, %s630_s18  ;;  %p635_p10 = scmp.lt.u32.totalorder %s964_s10, %s1016_s3 }
  0x83   : > { %p636_p12 = scmp.lt.u32.totalorder %s634_s7, %s630_s18  ;;  %p638_p8 = scmp.lt.u32.totalorder %s630_s18, %s964_s10 }
  0x84   : > { %p632_p5 = pnand %p631_p1, %p1036_p9 }
  0x85   : > { %p637_p7 = por %p636_p12, %p635_p10 }
  0x86   : > { %p633_p3 = pneg %p632_p5 }
  0x87   : > { %p639_p13 = por %p638_p8, %p637_p7 }
  0x89   : > { %p640_p4 = pnand %p639_p13, %p633_p3 }
  0x8b   : > { %643 = shalt.err (!%p640_p4)
}
  0x8c   : > { %s714_s27 = smov 128   ;;  %s715_s0 = smov 8  }
  0x8d   : > { %483 = dma.vmem_to_hbm [thread:$0]  (%p1036_p9), %s959_s8, 768, %s964_s10, %s325_s15, %s714_s27, %s714_s27, %s715_s0  }
  0x8e PF: > { %s355_s11 = sand.u32 1, %s686_s12   ;;  %p1037_p0 = scmp.ne.s32.totalorder %s1025_s24, 0 }
  0x8f   : > { %p1038_p11 = scmp.ge.s32.totalorder %s706_s17, 2  ;;  %s356_s25 = scalar_lea.sflag [#allocation4], %s355_s11 }
  0x91   : > { %p497_p6 = pnand %p1038_p11, %p1037_p0 }
  0x93   : > { %681 = dma.done.wait (!%p497_p6), %s356_s25, 768  }
  0x94   : > { %683 = vsyncadd (!%p497_p6), %s356_s25, 4294966528  ;;  %s21_s17 = sadd.s32 1, %s706_s17   ;;  %s1039_s12 = smov %s690_s13 }
  0x95   : > { %p18_p2 = scmp.ge.s32.totalorder %s21_s17, 4   ;;  %s1040_s13 = smov %s694_s14 }
  0x96   : > { %s1041_s14 = smov %s865_s9  ;;  %s1042_s15 = smov %s702_s16 }
  0x97   : > { %s1043_s16 = smov %s1045_s29  ;;  %20 = sbr.rel (!%p18_p2) target bundleno = 10 (0xa), region = 88 }
  0x9e   :  { %361 = vsyncpa [#allocation3], 1 }
  0x9f   :  { %363 = vsyncpa [#allocation3 + $0x1], 1 }
  0xa0   :  { %364 = vsyncpa [#allocation4], 1 }
  0xa1   :  { %366 = vsyncpa [#allocation4 + $0x1], 1 }
  0xa2   :  { %367 = vsyncpa [#allocation5], 1 }
  0xa3   :  { %369 = vsyncpa [#allocation5 + $0x1], 1 }
  0xa4   :  { %370 = vsyncpa [#allocation7], 1 }

</bundles_post_ra>
